<compile_context>
chip_gen: v5e
topology: v5e:2x2
jax: 0.10.0
libtpu: 0.0.40
codegen_flags: <defaults>
</compile_context>

<pallas_src>
import functools

import jax
import jax.numpy as jnp
from jax.experimental import pallas as pl
from jax.experimental.pallas import tpu as pltpu

BN_EPS = 1e-5  # nn.BatchNorm1d default eps


def _encoder_head_kernel(feats_ref, w_ref, b_ref, gamma_ref, beta_ref,
                         out_ref, acc_ref, *, inv_s):
    """Streamed avg-pool -> Linear -> BatchNorm1d (train-mode).

    feats_ref : [tS, B, C] bf16/f32 spatial tile of the backbone feature map
    w_ref     : [C, E]     embed weight (transposed vs. PyTorch's [E, C])
    b_ref     : [1, E]     embed bias
    gamma_ref : [1, E]     BN weight
    beta_ref  : [1, E]     BN bias
    out_ref   : [B, E]     f32 output (resident across the S grid)
    acc_ref   : [B, C]     f32 spatial-sum accumulator (VMEM scratch)
    """
    s = pl.program_id(0)

    @pl.when(s == 0)
    def _():
        acc_ref[...] = jnp.zeros_like(acc_ref)

    # Streamed partial sum: narrow input dtype on the wire, f32 accumulation.
    acc_ref[...] += jnp.sum(feats_ref[...], axis=0, dtype=jnp.float32)

    @pl.when(s == pl.num_programs(0) - 1)
    def _():
        # AdaptiveAvgPool2d((1,1)) + view(B, -1): single scale of the accumulator.
        pooled = acc_ref[...] * inv_s                                   # [B, C]

        # self.embed : Linear(C -> E) on the MXU.
        y = jnp.dot(pooled, w_ref[...].astype(jnp.float32),
                    preferred_element_type=jnp.float32) + b_ref[...]    # [B, E]

        # self.batchnorm : BatchNorm1d(E), batch statistics over the FULL batch.
        mu = jnp.mean(y, axis=0, keepdims=True)                         # [1, E]
        var = jnp.mean((y - mu) ** 2, axis=0, keepdims=True)            # biased
        y_hat = (y - mu) * jax.lax.rsqrt(var + BN_EPS)
        out_ref[...] = (gamma_ref[...] * y_hat + beta_ref[...]).astype(out_ref.dtype)


def _pick_spatial_tile(S, B, C, itemsize, budget_bytes=2 * 1024 * 1024):
    """Largest divisor of S whose [tS, B, C] tile stays under `budget_bytes`.

    Budget is per pipeline buffer (Pallas double-buffers inputs), chosen small
    enough to be safe under v5e's 16 MiB scoped VMEM and v7x's 64 MiB physical.
    """
    max_ts = max(1, budget_bytes // max(1, B * C * itemsize))
    ts = 1
    for d in range(1, S + 1):
        if S % d == 0 and d <= max_ts:
            ts = d
    return ts


def encoder_cnn_head(feats_smc, w, b, gamma, beta, *, spatial_tile=None):
    """feats_smc: [S, B, C] backbone features (bf16 or f32). Returns [B, E] f32."""
    S, B, C = feats_smc.shape
    Cw, E = w.shape
    assert Cw == C, "weight must be [C, E] (transposed PyTorch Linear weight)"

    # Lane-dense output: pad embed dim to a multiple of 128 (BN is per-feature,
    # so zero-padded columns never affect the real ones); slice afterwards.
    E_pad = ((E + 127) // 128) * 128
    if E_pad != E:
        pad = E_pad - E
        w = jnp.pad(w, ((0, 0), (0, pad)))
        b = jnp.pad(b, ((0, 0), (0, pad)))
        gamma = jnp.pad(gamma, ((0, 0), (0, pad)))
        beta = jnp.pad(beta, ((0, 0), (0, pad)))

    tS = spatial_tile if spatial_tile is not None else _pick_spatial_tile(
        S, B, C, jnp.dtype(feats_smc.dtype).itemsize)
    assert S % tS == 0, "spatial tile must divide S"
    grid = (S // tS,)

    kernel = functools.partial(_encoder_head_kernel, inv_s=1.0 / S)

    feats_bytes = feats_smc.size * jnp.dtype(feats_smc.dtype).itemsize
    cost = pl.CostEstimate(
        flops=int(B * S * C + 2 * B * C * E_pad + 8 * B * E_pad),
        transcendentals=int(E_pad),
        bytes_accessed=int(feats_bytes
                           + w.size * jnp.dtype(w.dtype).itemsize
                           + 3 * E_pad * 4
                           + B * E_pad * 4),
    )

    out = pl.pallas_call(
        kernel,
        out_shape=jax.ShapeDtypeStruct((B, E_pad), jnp.float32),
        grid_spec=pltpu.PrefetchScalarGridSpec(
            num_scalar_prefetch=0,
            grid=grid,
            in_specs=[
                # Streamed feature tiles: [tS, B, C]; last two dims are full
                # array dims so any tS (e.g. 7 for S=49) is legal.
                pl.BlockSpec((tS, B, C), lambda s: (s, 0, 0)),
                # Weights / BN params: constant index -> resident across S grid.
                pl.BlockSpec((C, E_pad), lambda s: (0, 0)),
                pl.BlockSpec((1, E_pad), lambda s: (0, 0)),
                pl.BlockSpec((1, E_pad), lambda s: (0, 0)),
                pl.BlockSpec((1, E_pad), lambda s: (0, 0)),
            ],
            out_specs=pl.BlockSpec((B, E_pad), lambda s: (0, 0)),
            scratch_shapes=[pltpu.VMEM((B, C), jnp.float32)],
        ),
        compiler_params=pltpu.CompilerParams(
            dimension_semantics=("arbitrary",),   # S is a reduction axis
        ),
        cost_estimate=cost,
    )(feats_smc, w, b, gamma, beta)

    return out[:, :E]


def reference_head(feats_smc, w, b, gamma, beta):
    pooled = jnp.mean(feats_smc.astype(jnp.float32), axis=0)          # [B, C]
    y = pooled @ w + b
    mu = jnp.mean(y, axis=0, keepdims=True)
    var = jnp.mean((y - mu) ** 2, axis=0, keepdims=True)
    return gamma * ((y - mu) * jax.lax.rsqrt(var + BN_EPS)) + beta


if __name__ == "__main__":
    # Small stand-in shapes consistent with the module:
    #   resnet50 trunk emits a [B, C_feat, Hf, Wf] map; real: C_feat=2048, Hf=Wf=7.
    #   Scaled down: B=2, C_feat=128, Hf=Wf=4, embed_size=128.
    B, Hf, Wf, C_feat, embed_size = 2, 4, 4, 128, 128
    S = Hf * Wf

    key = jax.random.PRNGKey(0)
    k_feat, k_w, k_b = jax.random.split(key, 3)

    # Backbone output feature map in [S, B, C] layout (NCHW -> spatial-major,
    # channels-last), streamed in bf16 to halve HBM traffic.
    feats = jax.random.normal(k_feat, (S, B, C_feat), dtype=jnp.float32)
    feats_bf16 = feats.astype(jnp.bfloat16)

    # nn.Linear(C_feat, embed_size) default init: U(-1/sqrt(C), 1/sqrt(C)).
    bound = 1.0 / jnp.sqrt(jnp.float32(C_feat))
    w = jax.random.uniform(k_w, (C_feat, embed_size), jnp.float32, -bound, bound)
    b = jax.random.uniform(k_b, (1, embed_size), jnp.float32, -bound, bound)

    # nn.BatchNorm1d default init: weight=1, bias=0.
    gamma = jnp.ones((1, embed_size), jnp.float32)
    beta = jnp.zeros((1, embed_size), jnp.float32)

    # spatial_tile=8 -> 2-step streamed grid even at this toy size, exercising
    # the accumulator init / finalize path.
    out = encoder_cnn_head(feats_bf16, w, b, gamma, beta, spatial_tile=8)
    out = jax.block_until_ready(out)

    ref = reference_head(feats_bf16, w, b, gamma, beta)
    assert out.shape == (B, embed_size)
    assert jnp.allclose(out, ref, atol=1e-3, rtol=1e-3), "mismatch vs reference"

    print("KERNEL_OK")
</pallas_src>

<mosaic_0001>
module attributes {stable_mosaic.version = 11 : i64} {
  func.func @_encoder_head_kernel(%arg0: i32, %arg1: memref<8x2x128xbf16, #tpu.memory_space<vmem>>, %arg2: memref<128x128xf32, #tpu.memory_space<vmem>>, %arg3: memref<1x128xf32, #tpu.memory_space<vmem>>, %arg4: memref<1x128xf32, #tpu.memory_space<vmem>>, %arg5: memref<1x128xf32, #tpu.memory_space<vmem>>, %arg6: memref<2x128xf32, #tpu.memory_space<vmem>>, %arg7: memref<2x128xf32, #tpu.memory_space<vmem>>) attributes {dimension_semantics = [#tpu.dimension_semantics<arbitrary>], iteration_bounds = array<i64: 2>, scalar_prefetch = 0 : i64, scratch_operands = 1 : i64, tpu.core_type = #tpu.core_type<tc>, window_params = [{transform_indices = @transform_0, window_bounds = array<i64: 8, 2, 128>}, {pipeline_mode = #tpu.pipeline_mode<synchronous>, transform_indices = @transform_1, window_bounds = array<i64: 128, 128>}, {pipeline_mode = #tpu.pipeline_mode<synchronous>, transform_indices = @transform_2, window_bounds = array<i64: 1, 128>}, {pipeline_mode = #tpu.pipeline_mode<synchronous>, transform_indices = @transform_3, window_bounds = array<i64: 1, 128>}, {pipeline_mode = #tpu.pipeline_mode<synchronous>, transform_indices = @transform_4, window_bounds = array<i64: 1, 128>}, {pipeline_mode = #tpu.pipeline_mode<synchronous>, transform_indices = @transform_5, window_bounds = array<i64: 2, 128>}]} {
    %c0_i32 = arith.constant 0 : i32
    %0 = arith.cmpi eq, %arg0, %c0_i32 : i32
    %1 = arith.extui %0 : i1 to i32
    %c0_i32_0 = arith.constant 0 : i32
    %2 = arith.cmpi ne, %1, %c0_i32_0 : i32
    scf.if %2 {
      %cst_8 = arith.constant 0.000000e+00 : f32
      %12 = vector.broadcast %cst_8 : f32 to vector<2x128xf32>
      %c0_9 = arith.constant 0 : index
      %c0_10 = arith.constant 0 : index
      %13 = vector.load %arg7[%c0_9, %c0_10] : memref<2x128xf32, #tpu.memory_space<vmem>>, vector<2x128xf32>
      tpu.vector_store %arg7[%c0_9, %c0_10], %12 {strides = array<i32>} : memref<2x128xf32, #tpu.memory_space<vmem>>, vector<2x128xf32>,
    } else {
    }
    %c0 = arith.constant 0 : index
    %c0_1 = arith.constant 0 : index
    %3 = vector.load %arg7[%c0, %c0_1] : memref<2x128xf32, #tpu.memory_space<vmem>>, vector<2x128xf32>
    %c0_2 = arith.constant 0 : index
    %c0_3 = arith.constant 0 : index
    %c0_4 = arith.constant 0 : index
    %4 = vector.load %arg1[%c0_2, %c0_3, %c0_4] : memref<8x2x128xbf16, #tpu.memory_space<vmem>>, vector<8x2x128xbf16>
    %5 = arith.extf %4 : vector<8x2x128xbf16> to vector<8x2x128xf32>
    %cst = arith.constant dense<0.000000e+00> : vector<2x128xf32>
    %6 = vector.multi_reduction <add>, %5, %cst [0] : vector<8x2x128xf32> to vector<2x128xf32>
    %7 = arith.addf %3, %6 : vector<2x128xf32>
    %c0_5 = arith.constant 0 : index
    %c0_6 = arith.constant 0 : index
    %8 = vector.load %arg7[%c0_5, %c0_6] : memref<2x128xf32, #tpu.memory_space<vmem>>, vector<2x128xf32>
    tpu.vector_store %arg7[%c0_5, %c0_6], %7 {strides = array<i32>} : memref<2x128xf32, #tpu.memory_space<vmem>>, vector<2x128xf32>,
    %c1_i32 = arith.constant 1 : i32
    %9 = arith.cmpi eq, %arg0, %c1_i32 : i32
    %10 = arith.extui %9 : i1 to i32
    %c0_i32_7 = arith.constant 0 : i32
    %11 = arith.cmpi ne, %10, %c0_i32_7 : i32
    scf.if %11 {
      %c0_8 = arith.constant 0 : index
      %c0_9 = arith.constant 0 : index
      %12 = vector.load %arg7[%c0_8, %c0_9] : memref<2x128xf32, #tpu.memory_space<vmem>>, vector<2x128xf32>
      %cst_10 = arith.constant 6.250000e-02 : f32
      %13 = vector.broadcast %cst_10 : f32 to vector<2x128xf32>
      %14 = arith.mulf %12, %13 : vector<2x128xf32>
      %c0_11 = arith.constant 0 : index
      %c0_12 = arith.constant 0 : index
      %15 = vector.load %arg2[%c0_11, %c0_12] : memref<128x128xf32, #tpu.memory_space<vmem>>, vector<128x128xf32>
      %cst_13 = arith.constant dense<0.000000e+00> : vector<2x128xf32>
      %16 = tpu.matmul %14, %15, %cst_13 {dimension_numbers = #tpu.dot_dimension_numbers<[1], [0], [0], [1], [0, 0, 1, 1], [], []>} : vector<2x128xf32>, vector<128x128xf32>, vector<2x128xf32> -> vector<2x128xf32>
      %c0_14 = arith.constant 0 : index
      %c0_15 = arith.constant 0 : index
      %17 = vector.load %arg3[%c0_14, %c0_15] : memref<1x128xf32, #tpu.memory_space<vmem>>, vector<1x128xf32>
      %18 = vector.broadcast %17 : vector<1x128xf32> to vector<2x128xf32>
      %19 = arith.addf %16, %18 : vector<2x128xf32>
      %cst_16 = arith.constant dense<0.000000e+00> : vector<128xf32>
      %20 = vector.multi_reduction <add>, %19, %cst_16 [0] : vector<2x128xf32> to vector<128xf32>
      %21 = vector.shape_cast %20 : vector<128xf32> to vector<1x128xf32>
      %cst_17 = arith.constant 2.000000e+00 : f32
      %22 = vector.broadcast %cst_17 : f32 to vector<1x128xf32>
      %23 = arith.divf %21, %22 : vector<1x128xf32>
      %24 = vector.broadcast %23 : vector<1x128xf32> to vector<2x128xf32>
      %25 = arith.subf %19, %24 : vector<2x128xf32>
      %26 = arith.mulf %25, %25 : vector<2x128xf32>
      %cst_18 = arith.constant dense<0.000000e+00> : vector<128xf32>
      %27 = vector.multi_reduction <add>, %26, %cst_18 [0] : vector<2x128xf32> to vector<128xf32>
      %28 = vector.shape_cast %27 : vector<128xf32> to vector<1x128xf32>
      %cst_19 = arith.constant 2.000000e+00 : f32
      %29 = vector.broadcast %cst_19 : f32 to vector<1x128xf32>
      %30 = arith.divf %28, %29 : vector<1x128xf32>
      %31 = vector.broadcast %23 : vector<1x128xf32> to vector<2x128xf32>
      %32 = arith.subf %19, %31 : vector<2x128xf32>
      %cst_20 = arith.constant 9.99999974E-6 : f32
      %33 = vector.broadcast %cst_20 : f32 to vector<1x128xf32>
      %34 = arith.addf %30, %33 : vector<1x128xf32>
      %35 = math.rsqrt %34 : vector<1x128xf32>
      %36 = vector.broadcast %35 : vector<1x128xf32> to vector<2x128xf32>
      %37 = arith.mulf %32, %36 : vector<2x128xf32>
      %c0_21 = arith.constant 0 : index
      %c0_22 = arith.constant 0 : index
      %38 = vector.load %arg4[%c0_21, %c0_22] : memref<1x128xf32, #tpu.memory_space<vmem>>, vector<1x128xf32>
      %39 = vector.broadcast %38 : vector<1x128xf32> to vector<2x128xf32>
      %40 = arith.mulf %39, %37 : vector<2x128xf32>
      %c0_23 = arith.constant 0 : index
      %c0_24 = arith.constant 0 : index
      %41 = vector.load %arg5[%c0_23, %c0_24] : memref<1x128xf32, #tpu.memory_space<vmem>>, vector<1x128xf32>
      %42 = vector.broadcast %41 : vector<1x128xf32> to vector<2x128xf32>
      %43 = arith.addf %40, %42 : vector<2x128xf32>
      %c0_25 = arith.constant 0 : index
      %c0_26 = arith.constant 0 : index
      %44 = vector.load %arg6[%c0_25, %c0_26] : memref<2x128xf32, #tpu.memory_space<vmem>>, vector<2x128xf32>
      tpu.vector_store %arg6[%c0_25, %c0_26], %43 {strides = array<i32>} : memref<2x128xf32, #tpu.memory_space<vmem>>, vector<2x128xf32>,
    } else {
    }
    return
  }
  func.func @transform_0(%arg0: i32) -> (i32, i32, i32) {
    %c0_i32 = arith.constant 0 : i32
    %c0_i32_0 = arith.constant 0 : i32
    %c0_i32_1 = arith.constant 0 : i32
    return %arg0, %c0_i32, %c0_i32_0 : i32, i32, i32
  }
  func.func @transform_1(%arg0: i32) -> (i32, i32) {
    %c0_i32 = arith.constant 0 : i32
    %c0_i32_0 = arith.constant 0 : i32
    %c0_i32_1 = arith.constant 0 : i32
    return %c0_i32, %c0_i32_0 : i32, i32
  }
  func.func @transform_2(%arg0: i32) -> (i32, i32) {
    %c0_i32 = arith.constant 0 : i32
    %c0_i32_0 = arith.constant 0 : i32
    %c0_i32_1 = arith.constant 0 : i32
    return %c0_i32, %c0_i32_0 : i32, i32
  }
  func.func @transform_3(%arg0: i32) -> (i32, i32) {
    %c0_i32 = arith.constant 0 : i32
    %c0_i32_0 = arith.constant 0 : i32
    %c0_i32_1 = arith.constant 0 : i32
    return %c0_i32, %c0_i32_0 : i32, i32
  }
  func.func @transform_4(%arg0: i32) -> (i32, i32) {
    %c0_i32 = arith.constant 0 : i32
    %c0_i32_0 = arith.constant 0 : i32
    %c0_i32_1 = arith.constant 0 : i32
    return %c0_i32, %c0_i32_0 : i32, i32
  }
  func.func @transform_5(%arg0: i32) -> (i32, i32) {
    %c0_i32 = arith.constant 0 : i32
    %c0_i32_0 = arith.constant 0 : i32
    %c0_i32_1 = arith.constant 0 : i32
    return %c0_i32, %c0_i32_0 : i32, i32
  }
}

</mosaic_0001>

<bundles_post_ra>
// kernel: tpu_custom_call.1
= control target key start
LH: loop header
LB: loop body
LE: loop exit
PB: predicated region body
PF: predicated region fallthrough
CT: control target
= control target key end

     0   :  { %10 = vsyncpa [#allocation4], 0  ;;  %s833_s0 = inlined_call_operand.hbm [shape: bf16[16,2,128], index: 0, kind: input, shape index: {}]   ;;  %s834_s1 = inlined_call_operand.hbm [shape: f32[128,128], index: 1, kind: input, shape index: {}]   ;;  %s835_s2 = inlined_call_operand.vmem [shape: f32[1,128], index: 2, kind: input, shape index: {}]   ;;  %s836_s3 = inlined_call_operand.vmem [shape: f32[1,128], index: 3, kind: input, shape index: {}]   ;;  %s837_s4 = inlined_call_operand.vmem [shape: f32[1,128], index: 4, kind: input, shape index: {}]   ;;  %s838_s5 = inlined_call_operand.hbm [shape: f32[2,128], index: 5, kind: output, shape index: {}]  }
   0x1   :  { %12 = vsyncpa [#allocation4 + $0x1], 0 }
   0x2   :  { %13 = vsyncpa [#allocation7], 0 }
   0x3   :  { %14 = vsyncpa [#allocation5], 0  ;;  %s708_s18 = smov 0   ;;  %s710_s19 = smov 0  }
   0x4   :  { %s712_s20 = smov 0   ;;  %s714_s21 = smov 0  }
   0x5 LB: > { %s727_s22 = sadd.s32 4294967295, %s668_s21   ;;  %p40_p0 = scmp.ne.s32.totalorder %s660_s19, %s656_s18  ;;  %s668_s21 = sphi %s714_s21, %s845_s21   ;;  %s664_s20 = sphi %s712_s20, %s844_s20   ;;  %s660_s19 = sphi %s710_s19, %s843_s19   ;;  %s656_s18 = sphi %s708_s18, %s842_s18  }
   0x6   : > { %p41_p1 = scmp.eq.s32.totalorder %s727_s22, 0  ;;  %p454_p2 = scmp.ge.s32.totalorder %s668_s21, 1 }
   0x7   : > { %p156_p3 = scmp.lt.s32.totalorder %s668_s21, 3  ;;  %p455_p4 = scmp.ne.s32.totalorder %s727_s22, 0 }
   0x8   : > { %p736_p5 = por %p41_p1, %p40_p0  ;;  %s167_s26 = sshll.u32 %s834_s1, 4  ;;  %s168_s26 = int_to_ptr.hbm [resolvable:$true] %s167_s26 }
   0x9   : > { %p743_p6 = pnand %p454_p2, %p156_p3  ;;  %s670_s28 = smov [#allocation6]  }
   0xa   : > { %s169_s29 = sshll.u32 %s670_s28, 4  ;;  %s752_s30 = sadd.s32 1, %s668_s21   ;;  %s170_s29 = int_to_ptr.vmem [resolvable:$true] %s169_s29 }
   0xb   : > { %p478_p7 = pneg %p743_p6  ;;  %s671_s6 = smov 128  }
   0xc   : > { %s672_s7 = smov 8   ;;  %s24_s8 = ssub.s32 %s668_s21, %s752_s30 }
   0xd   : > { %p479_p8 = pnand %p478_p7, %p41_p1  ;;  %s27_s9 = sadd.s32 1, %s664_s20 }
   0xe   : > { %p25_p9 = scmp.eq.s32.totalorder %s24_s8, 0  ;;  %p34_p10 = scmp.ne.s32.totalorder %s664_s20, %s660_s19 }
   0xf   : > { %481 = dma.hbm_to_vmem [thread:$0]  (!%p479_p8), %s168_s26, 2048, %s170_s29, [#allocation7], %s671_s6, %s671_s6, %s672_s7  }
  0x10   : > { %p35_p11 = scmp.eq.s32.totalorder %s668_s21, 0  ;;  %p487_p12 = scmp.lt.s32.totalorder %s668_s21, 2 }
  0x11   : > { %s762_s10 = scalar_select %p25_p9, %s664_s20, %s27_s9  }
  0x12   : > { %p36_p13 = por %p35_p11, %p34_p10  ;;  %s192_s11 = sand.u32 1, %s664_s20  }
  0x13   : > { %s457_s12 = sshll.u32 %s192_s11, 3  ;;  %s458_s13 = sshll.u32 %s668_s21, 3 }
  0x14   : > { %s200_s16 = scalar_lea.hbm %s833_s0, %s458_s13  ;;  %s196_s17 = scalar_lea.vmem [#allocation3], %s457_s12 }
  0x15   : > { %s203_s18 = sshll.u32 %s196_s17, 4  ;;  %s201_s24 = sshll.u32 %s200_s16, 4  ;;  %s204_s18 = int_to_ptr.vmem [resolvable:$true] %s203_s18  ;;  %s202_s24 = int_to_ptr.hbm [resolvable:$true] %s201_s24 }
  0x16   : > { %p769_p0 = pnand %p487_p12, %p36_p13  ;;  %s193_s26 = scalar_lea.sflag [#allocation4], %s192_s11 }
  0x17   : > { %s568_s28 = sshra.s32 %s202_s24, 4  ;;  %s575_s7 = scalar_lea.hbm %s833_s0, 16  ;;  %s569_s28 = int_to_ptr.hbm [resolvable:$true] %s568_s28 }
  0x18   : > { %s570_s29 = scalar_lea.hbm %s569_s28, 8  ;;  %p572_p3 = pneg %p769_p0 }
  0x19   : > { %p571_p2 = scmp.ne.s32.totalorder %s569_s28, %s570_s29  ;;  %p576_p9 = scmp.lt.s32.totalorder %s569_s28, %s833_s0 }
  0x1a   : > { %p577_p10 = scmp.lt.s32.totalorder %s575_s7, %s570_s29 }
  0x1b   : > { %p573_p7 = pnand %p572_p3, %p571_p2 }
  0x1c   : > { %p578_p11 = por %p577_p10, %p576_p9 }
  0x1d   : > { %p574_p8 = pneg %p573_p7 }
  0x1f   : > { %p579_p12 = pnand %p578_p11, %p574_p8 }
  0x21   : > { %582 = shalt.err (!%p579_p12)
}
  0x22   : > { %s673_s11 = smov 16   ;;  %s674_s12 = smov 1  }
  0x23   : > { %485 = dma.hbm_to_vmem [thread:$0]  (!%p769_p0), %s202_s24, 128, %s204_s18, %s193_s26, %s673_s11, %s673_s11, %s674_s12  }
  0x24   : > { %215 = sbr.rel (%p743_p6) target bundleno = 298 (0x12a), region = 40  ;;  %s217_s13 = sand.u32 (!%p743_p6), 1, %s660_s19  }
  0x25   : > { %s460_s14 = sshll.u32 (!%p743_p6), %s217_s13, 3  ;;  %s218_s15 = scalar_lea.sflag (!%p743_p6), [#allocation4], %s217_s13 }
  0x26   : > { %s221_s16 = scalar_lea.vmem (!%p743_p6), [#allocation3], %s460_s14 }
  0x29   : > { %643 = dma.done.wait (%p736_p5), %s218_s15, 128  }
  0x2a   : > { %645 = vsyncadd (%p736_p5), %s218_s15, 4294967168 }
  0x2b   : > { %647 = dma.done.wait (%p41_p1), [#allocation7], 2048  }
  0x2c   : > { %649 = vsyncadd (%p41_p1), [#allocation7], 4294965248  ;;  %253 = sbr.rel (%p455_p4) target bundleno = 51 (0x33), region = 52 }
  0x31   : > { %v675_v0 = vmov 0.0  }
  0x32   : > { %254 = vst [vmem:[#allocation2] sm:$0x3] %v675_v0 }
  0x33 PF: > { %v256_v1 = vld [vmem:[%s221_s16] sm:$0x1]  ;;  %v257_v2 = vld [vmem:[%s221_s16 + $0x1] sm:$0x1]  ;;  %v258_v3 = vld [vmem:[%s221_s16 + $0x2] sm:$0x1] }
  0x34   : > { %v259_v4 = vld [vmem:[%s221_s16 + $0x3] sm:$0x1]  ;;  %v260_v5 = vld [vmem:[%s221_s16 + $0x4] sm:$0x1]  ;;  %v264_v6 = vunpack.c.l.bf16 %v256_v1  ;;  %v265_v7 = vunpack.c.l.bf16 %v257_v2  ;;  %v266_v8 = vunpack.c.l.bf16 %v258_v3  ;;  %v261_v10 = vld [vmem:[%s221_s16 + $0x5] sm:$0x1] }
  0x35   : > { %v267_v9 = vunpack.c.l.bf16 %v259_v4  ;;  %vm272_vm0 = vcmask 1041408   ;;  %v268_v11 = vunpack.c.l.bf16 %v260_v5  ;;  %v262_v15 = vld [vmem:[%s221_s16 + $0x6] sm:$0x1]  ;;  %v269_v17 = vunpack.c.l.bf16 %v261_v10  ;;  %v263_v19 = vld [vmem:[%s221_s16 + $0x7] sm:$0x1]  ;;  %p463_p1 = scmp.ne.s32.totalorder %s727_s22, 1 }
  0x36   : > { %v273_v12 = vsel %vm272_vm0, %v264_v6, 0.0  ;;  %v274_v13 = vsel %vm272_vm0, %v265_v7, 0.0  ;;  %v276_v14 = vsel %vm272_vm0, %v266_v8, 0.0  ;;  %v270_v21 = vunpack.c.l.bf16 %v262_v15 }
  0x37   : > { %v275_v16 = vadd.f32 %v274_v13, %v273_v12  ;;  %v278_v18 = vsel %vm272_vm0, %v267_v9, 0.0  ;;  %v280_v22 = vsel %vm272_vm0, %v268_v11, 0.0  ;;  %v271_v24 = vunpack.c.l.bf16 %v263_v19 }
  0x38   : > { %v282_v25 = vsel %vm272_vm0, %v269_v17, 0.0  ;;  %v284_v27 = vsel %vm272_vm0, %v270_v21, 0.0 }
  0x39   : > { %v277_v20 = vadd.f32 %v276_v14, %v275_v16  ;;  %v286_v29 = vsel %vm272_vm0, %v271_v24, 0.0  ;;  %v255_v31 = vld [vmem:[#allocation2] sm:$0x3] }
  0x3b   : > { %v279_v23 = vadd.f32 %v278_v18, %v277_v20 }
  0x3d   : > { %v281_v26 = vadd.f32 %v280_v22, %v279_v23 }
  0x3f   : > { %v283_v28 = vadd.f32 %v282_v25, %v281_v26 }
  0x41   : > { %v285_v30 = vadd.f32 %v284_v27, %v283_v28 }
  0x43   : > { %v287_v32 = vadd.f32 %v286_v29, %v285_v30  ;;  %293 = sbr.rel (%p463_p1) target bundleno = 293 (0x125), region = 56 }
  0x45   : > { %v288_v33 = vadd.f32 %v287_v32, %v255_v31 }
  0x47   : > { %289 = vst [vmem:[#allocation2] sm:$0x3] %v288_v33 }
  0x48   : > { %v311_v34 = vld [vmem:[#allocation6 + $0x78] sm:$0xff]  ;;  %v310_v35 = vld [vmem:[#allocation6 + $0x70] sm:$0xff]  ;;  %v309_v36 = vld [vmem:[#allocation6 + $0x68] sm:$0xff]  ;;  %v676_v52 = vmov 2.0  }
  0x49   : > { %316 = vmatpush.msra.mxu0 %v311_v34  ;;  %v308_v37 = vld [vmem:[#allocation6 + $0x60] sm:$0xff]  ;;  %v307_v38 = vld [vmem:[#allocation6 + $0x58] sm:$0xff]  ;;  %v306_v39 = vld [vmem:[#allocation6 + $0x50] sm:$0xff]  ;;  %534 = vrcp.f32 %v676_v52 }
  0x4a   : > { %v305_v40 = vld [vmem:[#allocation6 + $0x48] sm:$0xff]  ;;  %v304_v41 = vld [vmem:[#allocation6 + $0x40] sm:$0xff]  ;;  %v303_v42 = vld [vmem:[#allocation6 + $0x38] sm:$0xff] }
  0x4b   : > { %317 = vmatpush.msra.mxu0 %v310_v35  ;;  %v302_v43 = vld [vmem:[#allocation6 + $0x30] sm:$0xff]  ;;  %v301_v44 = vld [vmem:[#allocation6 + $0x28] sm:$0xff]  ;;  %v300_v45 = vld [vmem:[#allocation6 + $0x20] sm:$0xff] }
  0x4c   : > { %v299_v46 = vld [vmem:[#allocation6 + $0x18] sm:$0xff]  ;;  %v298_v47 = vld [vmem:[#allocation6 + $0x10] sm:$0xff]  ;;  %v297_v49 = vld [vmem:[#allocation6 + $0x8] sm:$0xff] }
  0x4d   : > { %318 = vmatpush.msra.mxu0 %v309_v36  ;;  %v296_v50 = vld [vmem:[#allocation6] sm:$0xff]  ;;  %v531_v54 = vld [vmem:[%s835_s2] ss:$0 sm:$0xff] }
  0x4e   : > { %v294_v48 = vld [vmem:[#allocation2] sm:$0x3] }
  0x4f   : > { %319 = vmatpush.msra.mxu0 %v308_v37  ;;  %v295_v51 = vmul.f32 0.0625, %v294_v48  ;;  %v535_v53 = vpop.eup %534  ;;  %v532_v23 = vld [vmem:[%s836_s3] ss:$0 sm:$0xff] }
  0x50   : > { %v344_v55 = vmul.f32 2.0, %v535_v53  ;;  %vm348_vm1 = vweird.f32 %v535_v53  ;;  %v533_v26 = vld [vmem:[%s837_s4] ss:$0 sm:$0xff] }
  0x51   : > { %320 = vmatpush.msra.mxu0 %v307_v38 }
  0x52   : > { %v345_v58 = vsub.f32 1.0, %v344_v55 }
  0x53   : > { %321 = vmatpush.msra.mxu0 %v306_v39 }
  0x54   : > { %v346_v61 = vmul.f32 %v535_v53, %v345_v58 }
  0x55   : > { %322 = vmatpush.msra.mxu0 %v305_v40 }
  0x56   : > { %v347_v0 = vadd.f32 %v535_v53, %v346_v61 }
  0x57   : > { %323 = vmatpush.msra.mxu0 %v304_v41 }
  0x58   : > { %v349_v3 = vsel %vm348_vm1, %v535_v53, %v347_v0 }
  0x59   : > { %324 = vmatpush.msra.mxu0 %v303_v42 }
  0x5b   : > { %325 = vmatpush.msra.mxu0 %v302_v43 }
  0x5d   : > { %326 = vmatpush.msra.mxu0 %v301_v44 }
  0x5f   : > { %327 = vmatpush.msra.mxu0 %v300_v45 }
  0x61   : > { %328 = vmatpush.msra.mxu0 %v299_v46 }
  0x63   : > { %329 = vmatpush.msra.mxu0 %v298_v47 }
  0x65   : > { %330 = vmatpush.msra.mxu0 %v297_v49 }
  0x67   : > { %331 = vmatpush.msra.mxu0 %v296_v50 }
  0x68   : > { %332 = vmatmul.f32.vlgmr.msra.gmra.mxu0 %v295_v51 }
  0xe5   : > { %v333_v56 = vpop.f32.mrf.mxu0 }
  0xe6   : > { %v334_v57 = vadd.f32 %v531_v54, %v333_v56 }
  0xe8   : > { %v336_v59 = vsel %vm272_vm0, %v334_v57, 0.0 }
  0xe9   : > { %v337_v60 = vrot.slane %v336_v59, 4 }
  0xeb   : > { %v338_v62 = vadd.f32 %v337_v60, %v336_v59 }
  0xed   : > { %v339_v63 = vrot.slane %v338_v62, 2 }
  0xef   : > { %v340_v1 = vadd.f32 %v339_v63, %v338_v62 }
  0xf1   : > { %v341_v2 = vrot.slane %v340_v1, 1 }
  0xf3   : > { %v342_v4 = vadd.f32 %v341_v2, %v340_v1 }
  0xf5   : > { %v350_v5 = vmul.f32 %v349_v3, %v342_v4 }
  0xf7   : > { %v351_v6 = vsub.f32 %v334_v57, %v350_v5 }
  0xf9   : > { %v352_v7 = vmul.f32 %v351_v6, %v351_v6 }
  0xfb   : > { %v353_v8 = vsel %vm272_vm0, %v352_v7, 0.0 }
  0xfc   : > { %v354_v9 = vrot.slane %v353_v8, 4 }
  0xfe   : > { %v355_v10 = vadd.f32 %v354_v9, %v353_v8 }
 0x100   : > { %v356_v11 = vrot.slane %v355_v10, 2 }
 0x102   : > { %v357_v12 = vadd.f32 %v356_v11, %v355_v10 }
 0x104   : > { %v358_v13 = vrot.slane %v357_v12, 1 }
 0x106   : > { %v359_v14 = vadd.f32 %v358_v13, %v357_v12 }
 0x108   : > { %v360_v15 = vmul.f32 %v359_v14, %v349_v3 }
 0x10a   : > { %v361_v16 = vadd.f32 1e-05, %v360_v15 }
 0x10c   : > { %536 = vrsqrt.f32 %v361_v16  ;;  %vm368_vm3 = vweird.f32 %v361_v16 }
 0x112   : > { %v537_v17 = vpop.eup %536 }
 0x113   : > { %v363_v18 = vmul.f32 %v537_v17, %v361_v16  ;;  %vm369_vm2 = vweird.f32 %v537_v17 }
 0x114   : > { %vm370_vm4 = vmor %vm368_vm3, %vm369_vm2 }
 0x115   : > { %v364_v19 = vmul.f32 %v537_v17, %v363_v18 }
 0x117   : > { %v365_v20 = vmul.f32 0.5, %v364_v19 }
 0x119   : > { %v366_v21 = vsub.f32 1.5, %v365_v20 }
 0x11b   : > { %v367_v22 = vmul.f32 %v537_v17, %v366_v21 }
 0x11d   : > { %v371_v24 = vsel %vm370_vm4, %v537_v17, %v367_v22 }
 0x11e   : > { %v372_v25 = vmul.f32 %v371_v24, %v351_v6 }
 0x120   : > { %v377_v27 = vmul.f32 %v532_v23, %v372_v25 }
 0x122   : > { %v382_v28 = vadd.f32 %v533_v26, %v377_v27 }
 0x124   : > { %383 = vst [vmem:[#allocation8] sm:$0x3] %v382_v28 }
 0x125 PF: > { %p489_p4 = scmp.eq.s32.totalorder %s727_s22, 1  ;;  %s677_s26 = smov [#allocation8]  }
 0x126   : > { %s390_s28 = sshll.u32 %s677_s26, 4  ;;  %s392_s6 = sshll.u32 %s838_s5, 4  ;;  %s391_s28 = int_to_ptr.vmem [resolvable:$true] %s390_s28  ;;  %s393_s6 = int_to_ptr.hbm [resolvable:$true] %s392_s6 }
 0x127   : > { %475 = dma.vmem_to_hbm [thread:$0]  (%p489_p4), %s391_s28, 32, %s393_s6, [#allocation5]  }
 0x128   : > { %651 = dma.done.wait (%p489_p4), [#allocation5], 32  }
 0x129   : > { %653 = vsyncadd (%p489_p4), [#allocation5], 4294967264 }
 0x12a PF: > { %p17_p5 = scmp.ge.s32.totalorder %s752_s30, 4   ;;  %s842_s18 = smov %s660_s19 }
 0x12b   : > { %s843_s19 = smov %s664_s20  ;;  %s844_s20 = smov %s762_s10 }
 0x12c   : > { %s845_s21 = smov %s752_s30  ;;  %19 = sbr.rel (!%p17_p5) target bundleno = 5 (0x5), region = 89 }
 0x131   :  { %406 = vsyncpa [#allocation4], 1 }
 0x132   :  { %408 = vsyncpa [#allocation4 + $0x1], 1 }
 0x133   :  { %409 = vsyncpa [#allocation7], 1 }
 0x134   :  { %410 = vsyncpa [#allocation5], 1 }
 0x135   :  { %412 = vsyncpa [#allocation5 + $0x1], 1 }

</bundles_post_ra>
